<compile_context>
chip_gen: v7x
topology: tpu7x:2x2x1
jax: 0.10.0
libtpu: 0.0.40
codegen_flags: <defaults>
</compile_context>

<pallas_src>
import jax
import jax.numpy as jnp
from jax.experimental import pallas as pl
from jax.experimental.pallas import tpu as pltpu


def _round_up(x, m):
    return (x + m - 1) // m * m


def critic_kernel(xt_ref,                     # (in_na, TB)  streamed
                  w1t_ref, b1_ref,            # (fc1, in_na), (fc1, 1)
                  w2ht_ref, w2xt_ref, b2_ref, # (fc2, fc1), (fc2, in_na), (fc2, 1)
                  wq_ref, bq_ref,             # (fc2, 1), (1,) in SMEM
                  q_ref):                     # (1, TB)  lane-dense output
    xt = xt_ref[...]

    # Layer 1: h1^T = relu(W1^T @ x^T + b1)   -> (fc1, TB), lane-dense.
    h1t = jnp.dot(w1t_ref[...], xt, preferred_element_type=jnp.float32)
    h1t = jnp.maximum(h1t + b1_ref[...], 0.0)

    # Layer 2: concat([h1, a]) realised as W2h^T @ h1^T + W2x^T @ x^T, where
    # W2x is W2's action rows zero-padded over the state columns of x.
    h2t = (jnp.dot(w2ht_ref[...], h1t, preferred_element_type=jnp.float32)
           + jnp.dot(w2xt_ref[...], xt, preferred_element_type=jnp.float32)
           + b2_ref[...])
    h2t = jnp.maximum(h2t, 0.0)

    # Head q1: 1-output linear as VPU multiply + sublane (XLU) reduce; result
    # is already (1, TB) with batch on the lane axis — no relayout, no MXU pop.
    q = jnp.sum(h2t * wq_ref[...], axis=0, keepdims=True) + bq_ref[0]
    q_ref[...] = q.astype(q_ref.dtype)


def critic_forward(state, action, params, *, block_b=4096):
    """state: [B, input_dims], action: [B, n_actions] -> q: [B, 1]."""
    assert block_b % 128 == 0, "batch tile must be a multiple of 128 lanes"
    B = state.shape[0]
    na = action.shape[1]
    w1, b1 = params["w1"], params["b1"]          # (in+na, fc1), (1, fc1)
    w2h, w2a, b2 = params["w2h"], params["w2a"], params["b2"]
    wq, bq = params["wq"], params["bq"]          # (1, fc2), (1,)
    in_na, fc1 = w1.shape
    fc2 = w2h.shape[1]
    in_dims = in_na - na

    # Layer-1 concat once, then transpose so the batch rides the lane axis.
    xt = jnp.concatenate([state, action], axis=1).astype(jnp.float32).T  # (in_na, B)

    # Weight layouts for the transposed kernel (tiny, one-off XLA ops).
    w1t = w1.T                                                  # (fc1, in_na)
    b1c = b1.reshape(fc1, 1)
    w2ht = w2h.T                                                # (fc2, fc1)
    w2xt = jnp.concatenate(                                     # (fc2, in_na)
        [jnp.zeros((fc2, in_dims), jnp.float32), w2a.T], axis=1)
    b2c = b2.reshape(fc2, 1)
    wqc = wq.reshape(fc2, 1)
    bq = bq.reshape(1).astype(jnp.float32)

    # Batch tile: lane axis -> multiples of 128.  Keep >= 2 grid steps when the
    # batch allows it so v7x's two TensorCores both participate.
    b128 = _round_up(B, 128)
    tb = min(block_b, b128)
    if b128 >= 256:
        tb = min(tb, _round_up(b128 // 2, 128))
    tb = max(_round_up(tb, 128), 128)
    b_pad = _round_up(B, tb)
    if b_pad != B:
        xt = jnp.pad(xt, ((0, 0), (0, b_pad - B)))
    grid = (b_pad // tb,)

    def resident(shape):       # weights/biases: fetched once, stay in VMEM
        return pl.BlockSpec(shape, lambda i: (0, 0))

    out = pl.pallas_call(
        critic_kernel,
        out_shape=jax.ShapeDtypeStruct((1, b_pad), jnp.float32),
        grid=grid,
        in_specs=[
            pl.BlockSpec((in_na, tb), lambda i: (0, i)),         # x^T tile
            resident((fc1, in_na)),                              # W1^T
            resident((fc1, 1)),                                  # b1
            resident((fc2, fc1)),                                # W2h^T
            resident((fc2, in_na)),                              # W2x^T (padded)
            resident((fc2, 1)),                                  # b2
            resident((fc2, 1)),                                  # wq column
            pl.BlockSpec(memory_space=pltpu.MemorySpace.SMEM),   # bq scalar
        ],
        out_specs=pl.BlockSpec((1, tb), lambda i: (0, i)),
        compiler_params=pltpu.CompilerParams(
            dimension_semantics=("parallel",)),
    )(xt, w1t, b1c, w2ht, w2xt, b2c, wqc, bq)

    return out[0, :B].reshape(B, 1)


def init_params(key, input_dims, fc1_dims, fc2_dims, n_actions):
    """Deterministic synthetic init (mimics nn.Linear uniform(-1/sqrt(fan_in)))."""
    def linear_t(key, fan_in, fan_out):
        kw, kb = jax.random.split(key)
        bound = 1.0 / float(fan_in) ** 0.5
        # PyTorch stores (out, in); build the transposed (in, out) directly.
        w_t = jax.random.uniform(kw, (fan_in, fan_out), jnp.float32, -bound, bound)
        b = jax.random.uniform(kb, (1, fan_out), jnp.float32, -bound, bound)
        return w_t, b

    k1, k2, k3 = jax.random.split(key, 3)
    w1, b1 = linear_t(k1, input_dims + n_actions, fc1_dims)   # (in+na, fc1)
    w2, b2 = linear_t(k2, fc1_dims + n_actions, fc2_dims)     # (fc1+na, fc2)
    wq_t, bq = linear_t(k3, fc2_dims, 1)                      # (fc2, 1)

    return {
        "w1": w1, "b1": b1,
        # split layer-2's concat axis: rows [:fc1] multiply h1, rest multiply a
        "w2h": w2[:fc1_dims, :], "w2a": w2[fc1_dims:, :], "b2": b2,
        "wq": wq_t.T,           # (1, fc2) row
        "bq": bq.reshape(1),    # scalar bias (SMEM in the kernel)
    }


def critic_reference(state, action, p):
    """Plain-JAX reference identical to the PyTorch forward."""
    x = jnp.concatenate([state, action], axis=1)
    h1 = jax.nn.relu(x @ p["w1"] + p["b1"])
    x2 = jnp.concatenate([h1, action], axis=1)
    w2 = jnp.concatenate([p["w2h"], p["w2a"]], axis=0)
    h2 = jax.nn.relu(x2 @ w2 + p["b2"])
    return h2 @ p["wq"].T + p["bq"]


if __name__ == "__main__":
    # Small shapes consistent with the module: input_dims=(8,), fc1=32, fc2=32, n_actions=4
    B, INPUT_DIMS, FC1, FC2, NA = 2, 8, 32, 32, 4

    key = jax.random.PRNGKey(0)
    k_state, k_action, k_params = jax.random.split(key, 3)
    state = jax.random.normal(k_state, (B, INPUT_DIMS), jnp.float32)
    action = jax.random.normal(k_action, (B, NA), jnp.float32)
    params = init_params(k_params, INPUT_DIMS, FC1, FC2, NA)

    q = critic_forward(state, action, params)
    jax.block_until_ready(q)

    q_ref = critic_reference(state, action, params)
    assert q.shape == (B, 1)
    assert jnp.allclose(q, q_ref, atol=1e-5, rtol=1e-5)

    # Also exercise a multi-tile grid (>=2 steps) to cover the tiled path.
    B2 = 300
    ks, ka = jax.random.split(jax.random.PRNGKey(1))
    state2 = jax.random.normal(ks, (B2, INPUT_DIMS), jnp.float32)
    action2 = jax.random.normal(ka, (B2, NA), jnp.float32)
    q2 = critic_forward(state2, action2, params)
    jax.block_until_ready(q2)
    assert q2.shape == (B2, 1)
    assert jnp.allclose(q2, critic_reference(state2, action2, params),
                        atol=1e-5, rtol=1e-5)

    print("KERNEL_OK")
</pallas_src>

<mosaic_0001>
module attributes {stable_mosaic.version = 11 : i64} {
  func.func @critic_kernel(%arg0: i32, %arg1: memref<12x128xf32, #tpu.memory_space<vmem>>, %arg2: memref<32x12xf32, #tpu.memory_space<vmem>>, %arg3: memref<32x1xf32, #tpu.memory_space<vmem>>, %arg4: memref<32x32xf32, #tpu.memory_space<vmem>>, %arg5: memref<32x12xf32, #tpu.memory_space<vmem>>, %arg6: memref<32x1xf32, #tpu.memory_space<vmem>>, %arg7: memref<32x1xf32, #tpu.memory_space<vmem>>, %arg8: memref<1xf32, #tpu.memory_space<smem>>, %arg9: memref<1x128xf32, #tpu.memory_space<vmem>>) attributes {dimension_semantics = [#tpu.dimension_semantics<parallel>], iteration_bounds = array<i64: 1>, scalar_prefetch = 0 : i64, scratch_operands = 0 : i64, tpu.core_type = #tpu.core_type<tc>, window_params = [{transform_indices = @transform_0, window_bounds = array<i64: 12, 128>}, {pipeline_mode = #tpu.pipeline_mode<synchronous>, transform_indices = @transform_1, window_bounds = array<i64: 32, 12>}, {pipeline_mode = #tpu.pipeline_mode<synchronous>, transform_indices = @transform_2, window_bounds = array<i64: 32, 1>}, {pipeline_mode = #tpu.pipeline_mode<synchronous>, transform_indices = @transform_3, window_bounds = array<i64: 32, 32>}, {pipeline_mode = #tpu.pipeline_mode<synchronous>, transform_indices = @transform_4, window_bounds = array<i64: 32, 12>}, {pipeline_mode = #tpu.pipeline_mode<synchronous>, transform_indices = @transform_5, window_bounds = array<i64: 32, 1>}, {pipeline_mode = #tpu.pipeline_mode<synchronous>, transform_indices = @transform_6, window_bounds = array<i64: 32, 1>}, {transform_indices = @transform_7, window_bounds = array<i64: 1>}, {transform_indices = @transform_8, window_bounds = array<i64: 1, 128>}]} {
    %c0 = arith.constant 0 : index
    %c0_0 = arith.constant 0 : index
    %0 = vector.load %arg1[%c0, %c0_0] : memref<12x128xf32, #tpu.memory_space<vmem>>, vector<12x128xf32>
    %c0_1 = arith.constant 0 : index
    %c0_2 = arith.constant 0 : index
    %1 = vector.load %arg2[%c0_1, %c0_2] : memref<32x12xf32, #tpu.memory_space<vmem>>, vector<32x12xf32>
    %cst = arith.constant dense<0.000000e+00> : vector<32x128xf32>
    %2 = tpu.matmul %1, %0, %cst {dimension_numbers = #tpu.dot_dimension_numbers<[1], [0], [0], [1], [0, 0, 1, 1], [], []>} : vector<32x12xf32>, vector<12x128xf32>, vector<32x128xf32> -> vector<32x128xf32>
    %c0_3 = arith.constant 0 : index
    %c0_4 = arith.constant 0 : index
    %3 = vector.load %arg3[%c0_3, %c0_4] : memref<32x1xf32, #tpu.memory_space<vmem>>, vector<32x1xf32>
    %4 = vector.broadcast %3 : vector<32x1xf32> to vector<32x128xf32>
    %5 = arith.addf %2, %4 : vector<32x128xf32>
    %cst_5 = arith.constant 0.000000e+00 : f32
    %6 = vector.broadcast %cst_5 : f32 to vector<32x128xf32>
    %7 = arith.maximumf %5, %6 : vector<32x128xf32>
    %c0_6 = arith.constant 0 : index
    %c0_7 = arith.constant 0 : index
    %8 = vector.load %arg4[%c0_6, %c0_7] : memref<32x32xf32, #tpu.memory_space<vmem>>, vector<32x32xf32>
    %cst_8 = arith.constant dense<0.000000e+00> : vector<32x128xf32>
    %9 = tpu.matmul %8, %7, %cst_8 {dimension_numbers = #tpu.dot_dimension_numbers<[1], [0], [0], [1], [0, 0, 1, 1], [], []>} : vector<32x32xf32>, vector<32x128xf32>, vector<32x128xf32> -> vector<32x128xf32>
    %c0_9 = arith.constant 0 : index
    %c0_10 = arith.constant 0 : index
    %10 = vector.load %arg5[%c0_9, %c0_10] : memref<32x12xf32, #tpu.memory_space<vmem>>, vector<32x12xf32>
    %cst_11 = arith.constant dense<0.000000e+00> : vector<32x128xf32>
    %11 = tpu.matmul %10, %0, %cst_11 {dimension_numbers = #tpu.dot_dimension_numbers<[1], [0], [0], [1], [0, 0, 1, 1], [], []>} : vector<32x12xf32>, vector<12x128xf32>, vector<32x128xf32> -> vector<32x128xf32>
    %12 = arith.addf %9, %11 : vector<32x128xf32>
    %c0_12 = arith.constant 0 : index
    %c0_13 = arith.constant 0 : index
    %13 = vector.load %arg6[%c0_12, %c0_13] : memref<32x1xf32, #tpu.memory_space<vmem>>, vector<32x1xf32>
    %14 = vector.broadcast %13 : vector<32x1xf32> to vector<32x128xf32>
    %15 = arith.addf %12, %14 : vector<32x128xf32>
    %cst_14 = arith.constant 0.000000e+00 : f32
    %16 = vector.broadcast %cst_14 : f32 to vector<32x128xf32>
    %17 = arith.maximumf %15, %16 : vector<32x128xf32>
    %c0_15 = arith.constant 0 : index
    %c0_16 = arith.constant 0 : index
    %18 = vector.load %arg7[%c0_15, %c0_16] : memref<32x1xf32, #tpu.memory_space<vmem>>, vector<32x1xf32>
    %19 = vector.broadcast %18 : vector<32x1xf32> to vector<32x128xf32>
    %20 = arith.mulf %17, %19 : vector<32x128xf32>
    %cst_17 = arith.constant dense<0.000000e+00> : vector<128xf32>
    %21 = vector.multi_reduction <add>, %20, %cst_17 [0] : vector<32x128xf32> to vector<128xf32>
    %22 = vector.shape_cast %21 : vector<128xf32> to vector<1x128xf32>
    %c0_18 = arith.constant 0 : index
    %23 = memref.load %arg8[%c0_18] : memref<1xf32, #tpu.memory_space<smem>>
    %24 = vector.broadcast %23 : f32 to vector<1x128xf32>
    %25 = arith.addf %22, %24 : vector<1x128xf32>
    %c0_19 = arith.constant 0 : index
    %c0_20 = arith.constant 0 : index
    %26 = vector.load %arg9[%c0_19, %c0_20] : memref<1x128xf32, #tpu.memory_space<vmem>>, vector<1x128xf32>
    tpu.vector_store %arg9[%c0_19, %c0_20], %25 {strides = array<i32>} : memref<1x128xf32, #tpu.memory_space<vmem>>, vector<1x128xf32>,
    return
  }
  func.func @transform_0(%arg0: i32) -> (i32, i32) {
    %c0_i32 = arith.constant 0 : i32
    %c0_i32_0 = arith.constant 0 : i32
    return %c0_i32, %arg0 : i32, i32
  }
  func.func @transform_1(%arg0: i32) -> (i32, i32) {
    %c0_i32 = arith.constant 0 : i32
    %c0_i32_0 = arith.constant 0 : i32
    %c0_i32_1 = arith.constant 0 : i32
    return %c0_i32, %c0_i32_0 : i32, i32
  }
  func.func @transform_2(%arg0: i32) -> (i32, i32) {
    %c0_i32 = arith.constant 0 : i32
    %c0_i32_0 = arith.constant 0 : i32
    %c0_i32_1 = arith.constant 0 : i32
    return %c0_i32, %c0_i32_0 : i32, i32
  }
  func.func @transform_3(%arg0: i32) -> (i32, i32) {
    %c0_i32 = arith.constant 0 : i32
    %c0_i32_0 = arith.constant 0 : i32
    %c0_i32_1 = arith.constant 0 : i32
    return %c0_i32, %c0_i32_0 : i32, i32
  }
  func.func @transform_4(%arg0: i32) -> (i32, i32) {
    %c0_i32 = arith.constant 0 : i32
    %c0_i32_0 = arith.constant 0 : i32
    %c0_i32_1 = arith.constant 0 : i32
    return %c0_i32, %c0_i32_0 : i32, i32
  }
  func.func @transform_5(%arg0: i32) -> (i32, i32) {
    %c0_i32 = arith.constant 0 : i32
    %c0_i32_0 = arith.constant 0 : i32
    %c0_i32_1 = arith.constant 0 : i32
    return %c0_i32, %c0_i32_0 : i32, i32
  }
  func.func @transform_6(%arg0: i32) -> (i32, i32) {
    %c0_i32 = arith.constant 0 : i32
    %c0_i32_0 = arith.constant 0 : i32
    %c0_i32_1 = arith.constant 0 : i32
    return %c0_i32, %c0_i32_0 : i32, i32
  }
  func.func @transform_7(%arg0: i32) -> i32 {
    %c0_i32 = arith.constant 0 : i32
    %c0_i32_0 = arith.constant 0 : i32
    return %c0_i32 : i32
  }
  func.func @transform_8(%arg0: i32) -> (i32, i32) {
    %c0_i32 = arith.constant 0 : i32
    %c0_i32_0 = arith.constant 0 : i32
    return %c0_i32, %arg0 : i32, i32
  }
}

</mosaic_0001>

<bundles_post_ra>
// kernel: tpu_custom_call.1
= control target key start
LH: loop header
LB: loop body
LE: loop exit
PB: predicated region body
PF: predicated region fallthrough
CT: control target
= control target key end

     0   :  { %vm74_vm0 = vcmask 1043456   ;;  %vm582_vm1 = vmmov 1   ;;  %vm61_vm3 = vcmask 97280   ;;  %v583_v5 = vmov 0   ;;  %s747_s0 = inlined_call_operand.vmem [shape: f32[12,128], index: 0, kind: input, shape index: {}]   ;;  %s748_s1 = inlined_call_operand.vmem [shape: f32[32,12], index: 1, kind: input, shape index: {}]   ;;  %s749_s2 = inlined_call_operand.vmem [shape: f32[32,1], index: 2, kind: input, shape index: {}]   ;;  %s750_s3 = inlined_call_operand.vmem [shape: f32[32,32], index: 3, kind: input, shape index: {}]   ;;  %s751_s4 = inlined_call_operand.vmem [shape: f32[32,12], index: 4, kind: input, shape index: {}]   ;;  %s752_s5 = inlined_call_operand.vmem [shape: f32[32,1], index: 5, kind: input, shape index: {}]   ;;  %s753_s6 = inlined_call_operand.vmem [shape: f32[32,1], index: 6, kind: input, shape index: {}]   ;;  %s754_s7 = inlined_call_operand.<no memory space> [shape: f32[1], index: 7, kind: input, shape index: {}]   ;;  %s755_s8 = inlined_call_operand.hbm [shape: f32[1,128], index: 8, kind: output, shape index: {}]  }
   0x1   :  { %v31_v0 = vld [vmem:[%s747_s0] sm:$0xff]  ;;  %v32_v1 = vld [vmem:[%s747_s0 + $0x8] sm:$0xf]  ;;  %vm639_vm2 = vmpackc.low %vm74_vm0, %vm582_vm1  ;;  %556 = vset.pattern.permute.xlu0 %v583_v5  ;;  %557 = vset.pattern.permute.xlu1 %v583_v5 }
   0x2   :  { %v33_v2 = vld [vmem:[%s748_s1] sm:$0xff]  ;;  %v525_v3 = vpack.c.bf16 %v32_v1, %v31_v0  ;;  %v39_v7 = vld [vmem:[%s749_s2 + $0x10] sm:$0xff]  ;;  %v34_v8 = vld [vmem:[%s748_s1 + $0x8] sm:$0xff] }
   0x3   :  { %495 = vmatprep.mubr.msk.f32.mxu0 %vm61_vm3, %v33_v2  ;;  %v37_v6 = vld [vmem:[%s749_s2] sm:$0xff]  ;;  %v38_v9 = vld [vmem:[%s749_s2 + $0x8] sm:$0xff]  ;;  %v35_v10 = vld [vmem:[%s748_s1 + $0x10] sm:$0xff]  ;;  %53 = vperm.xlu1 %557, %v39_v7  }
   0x4   :  { %527 = vmatprep.subr.msk.bf16.mxu0 %vm639_vm2, %v525_v3  ;;  %43 = vperm.xlu0 %556, %v37_v6   ;;  %v40_v11 = vld [vmem:[%s749_s2 + $0x18] sm:$0xff] }
   0x5   :  { %530 = vmatpush3.bf16.msk.msra.mxu0 %vm639_vm2, %v525_v3  ;;  %533 = vmatprep.subr.msk.bf16.mxu1 %vm639_vm2, %v525_v3 }
   0x6   :  { %536 = vmatpush3.bf16.msk.msra.mxu1 %vm639_vm2, %v525_v3 }
   0x7   :  { %14 = vsyncpa [#allocation4], 0  ;;  %v36_v12 = vld [vmem:[%s748_s1 + $0x18] sm:$0xff]  ;;  %v370_v13 = vld [vmem:[%s752_s5] sm:$0xff]  ;;  %58 = vperm.xlu1 %557, %v40_v11   ;;  %vm272_vm4 = vcmask 261120   ;;  %s584_s28 = smov [#allocation3]  }
   0x8   :  { %496 = vmatmul.mubr.msk.f32.vlgmr.msra.gmra.mrb[0].mxu0 %vm61_vm3, %v34_v8  ;;  %48 = vperm.xlu0 %556, %v38_v9   ;;  %v371_v14 = vld [vmem:[%s752_s5 + $0x8] sm:$0xff]  ;;  %v372_v15 = vld [vmem:[%s752_s5 + $0x10] sm:$0xff]  ;;  %v373_v16 = vld [vmem:[%s752_s5 + $0x18] sm:$0xff]  ;;  %s449_s29 = sshll.u32 %s584_s28, 4  ;;  %s450_s29 = int_to_ptr.vmem [resolvable:$true] %s449_s29 }
   0x9   :  { %498 = vmatprep.mubr.msk.f32.mxu0 %vm61_vm3, %v35_v10  ;;  %v402_v17 = vld [vmem:[%s753_s6] sm:$0xff]  ;;  %v403_v18 = vld [vmem:[%s753_s6 + $0x8] sm:$0xff]  ;;  %v404_v19 = vld [vmem:[%s753_s6 + $0x10] sm:$0xff]  ;;  %s558_s30 = scalar_lea.vmem %s450_s29, 16  ;;  %s562_s1 = scalar_lea.vmem %s450_s29, 32 }
   0xa   :  { %v405_v20 = vld [vmem:[%s753_s6 + $0x18] sm:$0xff]  ;;  %v171_v21 = vld [vmem:[%s751_s4] sm:$0xff]  ;;  %v172_v22 = vld [vmem:[%s751_s4 + $0x8] sm:$0xff]  ;;  %p559_p0 = scmp.ne.s32.totalorder %s450_s29, %s558_s30  ;;  %p563_p1 = scmp.lt.s32.totalorder %s450_s29, %s450_s29 }
   0xb   :  { %381 = vperm.xlu1 %557, %v371_v14   ;;  %505 = vmatprep.mubr.msk.f32.mxu1 %vm61_vm3, %v171_v21  ;;  %v173_v23 = vld [vmem:[%s751_s4 + $0x10] sm:$0xff]  ;;  %v174_v24 = vld [vmem:[%s751_s4 + $0x18] sm:$0xff]  ;;  %v167_v25 = vld [vmem:[%s750_s3] sm:$0xff]  ;;  %p564_p2 = scmp.lt.s32.totalorder %s562_s1, %s558_s30 }
   0xc   :  { %499 = vmatmul.mubr.msk.f32.gmra.mrb[2].mxu0 %vm61_vm3, %v36_v12  ;;  %376 = vperm.xlu0 %556, %v370_v13   ;;  %v169_v26 = vld [vmem:[%s750_s3 + $0x10] sm:$0xff]  ;;  %v168_v45 = vld [vmem:[%s750_s3 + $0x8] sm:$0xff]  ;;  %v170_v46 = vld [vmem:[%s750_s3 + $0x18] sm:$0xff] }
   0xd   :  { %506 = vmatmul.mubr.msk.f32.vlgmr.msra.gmra.mrb[0].mxu1 %vm61_vm3, %v172_v22  ;;  %519 = vmatprep.mubr.msk.f32.mxu0 %vm272_vm4, %v167_v25  ;;  %p565_p3 = por %p564_p2, %p563_p1 }
   0xe   :  { %508 = vmatprep.mubr.msk.f32.mxu1 %vm61_vm3, %v173_v23 }
   0xf   :  { %391 = vperm.xlu1 %557, %v373_v16   ;;  %p566_p4 = pnand %p565_p3, %p559_p0 }
  0x10   :  { %386 = vperm.xlu0 %556, %v372_v15  }
  0x11   :  { %509 = vmatmul.mubr.msk.f32.gmra.mrb[2].mxu1 %vm61_vm3, %v174_v24 }
  0x12   :  { %522 = vmatprep.mubr.msk.f32.mxu1 %vm272_vm4, %v169_v26 }
  0x13   :  { %413 = vperm.xlu1 %557, %v403_v18  }
  0x14   :  { %408 = vperm.xlu0 %556, %v402_v17  }
  0x17   :  { %423 = vperm.xlu1 %557, %v405_v20  }
  0x18   :  { %418 = vperm.xlu0 %556, %v404_v19   ;;  %v440_v19 = vstv %s754_s7 }
  0x82   :  { %v54_v28 = vpop.permute.xlu1 %53 }
  0x83   :  { %v44_v27 = vpop.permute.xlu0 %43 }
  0x86   :  { %v59_v35 = vpop.permute.xlu1 %58 }
  0x87   :  { %v49_v29 = vpop.permute.xlu0 %48 }
  0x8a   :  { %v382_v50 = vpop.permute.xlu1 %381 }
  0x8b   :  { %v377_v49 = vpop.permute.xlu0 %376 }
  0x8e   :  { %v392_v52 = vpop.permute.xlu1 %391 }
  0x8f   :  { %v387_v51 = vpop.permute.xlu0 %386 }
  0x92   :  { %v414_v0 = vpop.permute.xlu1 %413 }
  0x93   :  { %v409_v60 = vpop.permute.xlu0 %408 }
  0x96   :  { %v424_v10 = vpop.permute.xlu1 %423 }
  0x97   :  { %v419_v7 = vpop.permute.xlu0 %418 }
  0xdb   :  { %v497_v30 = vpop.f32.mrb[0].mxu0 }
  0xdc   :  { %v150_v31 = vadd.f32 %v497_v30, %v49_v29  ;;  %v144_v32 = vpop.f32.mrb[1].mxu0 }
  0xdd   :  { %v145_v33 = vadd.f32 %v144_v32, %v44_v27 }
  0xde   :  { %v164_v34 = vmax.f32 %v150_v31, 0.0 }
  0xdf   :  { %v163_v36 = vmax.f32 %v145_v33, 0.0  ;;  %v500_v37 = vpop.f32.mrb[2].mxu0 }
  0xe0   :  { %v160_v38 = vadd.f32 %v500_v37, %v59_v35  ;;  %v154_v39 = vpop.f32.mrb[3].mxu0  ;;  %v507_v47 = vpop.f32.mrb[0].mxu1 }
  0xe1   :  { %v537_v40 = vpack.c.bf16 %v164_v34, %v163_v36  ;;  %v155_v41 = vadd.f32 %v154_v39, %v54_v28  ;;  %v253_v48 = vpop.f32.mrb[1].mxu1 }
  0xe2   :  { %v166_v42 = vmax.f32 %v160_v38, 0.0 }
  0xe3   :  { %v165_v43 = vmax.f32 %v155_v41, 0.0  ;;  %538 = vmatprep.subr.bf16.mxu0 %v537_v40  ;;  %545 = vmatprep.subr.bf16.mxu1 %v537_v40 }
  0xe4   :  { %540 = vmatpush3.bf16.msra.mxu0 %v537_v40  ;;  %547 = vmatpush3.bf16.msra.mxu1 %v537_v40 }
  0xe5   :  { %v541_v44 = vpack.c.bf16 %v166_v42, %v165_v43 }
  0xe7   :  { %542 = vmatprep.subr.bf16.mxu0 %v541_v44  ;;  %546 = vmatprep.subr.bf16.mxu1 %v541_v44 }
  0xe8   :  { %544 = vmatpush3.bf16.msra.mxu0 %v541_v44  ;;  %548 = vmatpush3.bf16.msra.mxu1 %v541_v44 }
  0xeb   :  { %520 = vmatmul.mubr.msk.f32.vlgmr.msra.gmra.mrb[4].mxu0 %vm272_vm4, %v168_v45  ;;  %523 = vmatmul.mubr.msk.f32.vlgmr.msra.gmra.mrb[2].mxu1 %vm272_vm4, %v170_v46 }
 0x1be   :  { %v521_v53 = vpop.f32.mrb[4].mxu0  ;;  %v524_v54 = vpop.f32.mrb[2].mxu1 }
 0x1bf   :  { %v357_v55 = vadd.f32 %v521_v53, %v507_v47  ;;  %v351_v56 = vpop.f32.mrb[5].mxu0  ;;  %v361_v57 = vpop.f32.mrb[3].mxu1  ;;  %v397_v62 = vadd.f32 %v524_v54, %v392_v52 }
 0x1c0   :  { %v352_v58 = vadd.f32 %v351_v56, %v253_v48  ;;  %v396_v59 = vadd.f32 %v387_v51, %v361_v57 }
 0x1c1   :  { %v395_v61 = vadd.f32 %v382_v50, %v357_v55  ;;  %v401_v5 = vmax.f32 %v397_v62, 0.0 }
 0x1c2   :  { %v394_v63 = vadd.f32 %v377_v49, %v352_v58  ;;  %v400_v3 = vmax.f32 %v396_v59, 0.0 }
 0x1c3   :  { %v399_v1 = vmax.f32 %v395_v61, 0.0  ;;  %v429_v11 = vmul.f32 %v424_v10, %v401_v5 }
 0x1c4   :  { %v398_v2 = vmax.f32 %v394_v63, 0.0  ;;  %v428_v8 = vmul.f32 %v419_v7, %v400_v3 }
 0x1c5   :  { %v427_v4 = vmul.f32 %v414_v0, %v399_v1 }
 0x1c6   :  { %v426_v6 = vmul.f32 %v409_v60, %v398_v2 }
 0x1c8   :  { %v430_v9 = vadd.f32 %v427_v4, %v426_v6 }
 0x1ca   :  { %v431_v12 = vadd.f32 %v430_v9, %v428_v8 }
 0x1cc   :  { %v432_v13 = vadd.f32 %v431_v12, %v429_v11 }
 0x1ce   :  { %v433_v14 = vrot.slane %v432_v13, 4 }
 0x1d0   :  { %v434_v15 = vadd.f32 %v433_v14, %v432_v13 }
 0x1d2   :  { %v435_v16 = vrot.slane %v434_v15, 2 }
 0x1d4   :  { %v436_v17 = vadd.f32 %v435_v16, %v434_v15 }
 0x1d6   :  { %v437_v18 = vrot.slane %v436_v17, 1 }
 0x1d8   :  { %v438_v20 = vadd.f32 %v437_v18, %v436_v17 }
 0x1da   :  { %v441_v21 = vadd.f32 %v440_v19, %v438_v20 }
 0x1dc   :  { %442 = vst [vmem:[#allocation3] sm:$0x1] %v441_v21 }
 0x1dd   :  { %569 = shalt.err (!%p566_p4)
}
 0x1de   :  { %s570_s11 = scalar_lea.hbm %s755_s8, 16 }
 0x1df   :  { %p571_p5 = scmp.ne.s32.totalorder %s755_s8, %s570_s11  ;;  %p574_p6 = scmp.lt.u32.totalorder %s570_s11, %s755_s8 }
 0x1e1   :  { %p576_p7 = pnand %p574_p6, %p571_p5 }
 0x1e3   :  { %579 = shalt.err (!%p576_p7)
}
 0x1e4   :  { %452 = dma.vmem_to_hbm [thread:$0]  %s450_s29, 16, %s755_s8, [#allocation4]  }
 0x1e5   :  { %580 = dma.done.wait [#allocation4], 16  }
 0x1e6   :  { %581 = vsyncadd [#allocation4], 4294967280 }
 0x1e7   :  { %456 = vsyncpa [#allocation4], 1 }

</bundles_post_ra>
